<compile_context>
chip_gen: v7x
topology: tpu7x:2x2x1
jax: 0.10.0
libtpu: 0.0.40
codegen_flags: <defaults>
</compile_context>

<pallas_src>
import functools

import jax
import jax.numpy as jnp
from jax.experimental import pallas as pl
from jax.experimental.pallas import tpu as pltpu


# ---------------------------------------------------------------------------
# Fused kernel: Conv1d('same') [one im2col matmul] + BN(batch stats) + ReLU
# ---------------------------------------------------------------------------
def fused_convblock_kernel(p_ref, w_ref, g_ref, be_ref, o_ref, *, eps):
    # p_ref : (M, KC)  bf16   im2col patches, M = N*L, KC = K*C_in (zero-padded)
    # w_ref : (KC, C)  bf16   tap-folded weights, C = C_out padded to 128 lanes
    # g_ref, be_ref : (1, C) f32   BN gamma / beta (zero-padded lanes)
    # o_ref : (M, C)   f32    fused output (lane-dense stores)
    m = o_ref.shape[0]

    # Conv: taps live in the contraction -> one MXU push for the whole batch,
    # bf16 operands, f32 accumulation.  (Conv bias omitted: it cancels exactly
    # under training-mode BatchNorm.)
    y = jnp.dot(p_ref[...], w_ref[...], preferred_element_type=jnp.float32)

    # BatchNorm (training-mode batch statistics, two-pass) + ReLU, all in f32.
    cnt = jnp.float32(m)
    mean = jnp.sum(y, axis=0, keepdims=True) / cnt                  # (1, C)
    centered = y - mean
    var = jnp.sum(centered * centered, axis=0, keepdims=True) / cnt  # (1, C)
    inv_std = jax.lax.rsqrt(var + eps)
    out = centered * (g_ref[...] * inv_std) + be_ref[...]
    o_ref[...] = jnp.maximum(out, 0.0).astype(o_ref.dtype)


# ---------------------------------------------------------------------------
# Wrapper
# ---------------------------------------------------------------------------
@functools.partial(jax.jit, static_argnames=("eps",))
def conv_block_forward(x_ncl, w_oik, bias, gamma, beta, eps=1e-5):
    """ConvBlock forward.  x_ncl: (N, C_in, L) f32 -> (N, C_out, L) f32.

    `bias` is accepted for nn.Conv1d API parity but NOT used: a per-channel
    constant added before training-mode BatchNorm cancels exactly in
    (y - mean), so dropping it is free (per perf review).
    """
    del bias
    N, C_in, L = x_ncl.shape
    C_out, _, K = w_oik.shape

    LANES = 128
    C_pad = ((C_out + LANES - 1) // LANES) * LANES       # lane-dense channels
    KC = K * C_in
    KC_pad = ((KC + 7) // 8) * 8                         # sublane-aligned contraction
    M = N * L

    pad_l = (K - 1) // 2                                 # PyTorch 'same', stride 1
    pad_r = K - 1 - pad_l

    # ---- Layout glue (fused XLA copies): NCL -> NLC, 'same' pad, im2col ----
    x_nlc = jnp.transpose(x_ncl, (0, 2, 1))              # (N, L, C_in)
    xp = jnp.pad(x_nlc, ((0, 0), (pad_l, pad_r), (0, 0)))  # (N, L+K-1, C_in)
    # patches[n, l, k, ci] = xp[n, l + k, ci]
    patches = jnp.stack([xp[:, k:k + L, :] for k in range(K)], axis=2)
    patches = patches.reshape(M, KC)
    patches = jnp.pad(patches, ((0, 0), (0, KC_pad - KC))).astype(jnp.bfloat16)
    # TODO(synk): for large K / C_in, build the im2col LHS inside the kernel
    #             (XLU sublane shifts of the padded input) to avoid the K-times
    #             input HBM traffic of materializing patches in the wrapper.

    # Tap-folded, lane-padded weight: w_mat[k*C_in + ci, co] = w_oik[co, ci, k].
    w_mat = jnp.transpose(w_oik, (2, 1, 0)).reshape(KC, C_out)
    w_mat = jnp.pad(w_mat, ((0, KC_pad - KC), (0, C_pad - C_out)))
    w_mat = w_mat.astype(jnp.bfloat16)

    def pad1(v):
        return jnp.pad(v, (0, C_pad - C_out)).reshape(1, C_pad).astype(jnp.float32)

    g2, be2 = pad1(gamma), pad1(beta)

    out_flat = pl.pallas_call(
        functools.partial(fused_convblock_kernel, eps=eps),
        out_shape=jax.ShapeDtypeStruct((M, C_pad), jnp.float32),
        grid_spec=pltpu.PrefetchScalarGridSpec(
            num_scalar_prefetch=0,
            grid=(1,),   # tiny problem: whole batch resident in VMEM, one step
            in_specs=[
                pl.BlockSpec((M, KC_pad), lambda i: (0, 0)),
                pl.BlockSpec((KC_pad, C_pad), lambda i: (0, 0)),
                pl.BlockSpec((1, C_pad), lambda i: (0, 0)),
                pl.BlockSpec((1, C_pad), lambda i: (0, 0)),
            ],
            out_specs=pl.BlockSpec((M, C_pad), lambda i: (0, 0)),
        ),
        compiler_params=pltpu.CompilerParams(
            dimension_semantics=("arbitrary",)),
        # TODO(synk): for production N*L, tile M on a 'parallel' grid axis
        #             (>=512-row blocks, pipeline_mode=pl.Buffered(2-3) on the
        #             patch spec, explicit vmem_limit_bytes) with per-tile
        #             partial sum/sumsq and a second normalization phase, so
        #             both v7x TensorCores get work and tiles fit 64 MiB VMEM.
        # TODO(synk): when L % 128 == 0, transpose the result tile in-kernel
        #             (XLU) and store NCL directly, deleting the wrapper's
        #             output transpose (one full HBM read+write of the output).
        # TODO(synk): on v6e/v7x pad C_out to 256 lanes when C_out is large
        #             (2x256^2 MXU push width); 128 is already optimal on v5e.
    )(patches, w_mat, g2, be2)

    # Drop lane padding and return PyTorch NCL layout.
    out = out_flat.reshape(N, L, C_pad)[:, :, :C_out]
    return jnp.transpose(out, (0, 2, 1))                 # (N, C_out, L)


# ---------------------------------------------------------------------------
# Pure-JAX reference (for correctness check only)
# ---------------------------------------------------------------------------
def reference(x_ncl, w_oik, bias, gamma, beta, eps=1e-5, conv_dtype=jnp.float32):
    y = jax.lax.conv_general_dilated(
        x_ncl.astype(conv_dtype), w_oik.astype(conv_dtype),
        window_strides=(1,), padding="SAME",
        dimension_numbers=("NCH", "OIH", "NCH"),
        preferred_element_type=jnp.float32,
    ) + bias[None, :, None]
    mean = y.mean(axis=(0, 2))
    var = ((y - mean[None, :, None]) ** 2).mean(axis=(0, 2))
    yn = (y - mean[None, :, None]) * jax.lax.rsqrt(var + eps)[None, :, None]
    yn = yn * gamma[None, :, None] + beta[None, :, None]
    return jnp.maximum(yn, 0.0)


if __name__ == "__main__":
    # Shapes consistent with ConvBlock(in_channels=4, out_channels=8, kernel_size=3)
    N, C_in, C_out, L, K = 2, 4, 8, 16, 3

    key = jax.random.PRNGKey(0)
    kx, kw, kb, kg, kbeta = jax.random.split(key, 5)

    x = jax.random.normal(kx, (N, C_in, L), dtype=jnp.float32)
    # Conv1d weight: (out_channels, in_channels, kernel_size); bias: (out_channels,)
    w = 0.1 * jax.random.normal(kw, (C_out, C_in, K), dtype=jnp.float32)
    b = 0.1 * jax.random.normal(kb, (C_out,), dtype=jnp.float32)
    # BatchNorm1d affine params: (num_features,)
    gamma = 1.0 + 0.1 * jax.random.normal(kg, (C_out,), dtype=jnp.float32)
    beta = 0.1 * jax.random.normal(kbeta, (C_out,), dtype=jnp.float32)

    out = jax.block_until_ready(conv_block_forward(x, w, b, gamma, beta))
    assert out.shape == (N, C_out, L)

    # Tight check: reference with the same bf16 conv operands / f32 accumulation.
    ref_bf16 = reference(x, w, b, gamma, beta, conv_dtype=jnp.bfloat16)
    assert jnp.allclose(out, ref_bf16, atol=2e-3, rtol=2e-3), \
        "mismatch vs bf16-operand reference"

    # Loose check: exact f32 module semantics (kernel uses bf16 MXU operands).
    ref_f32 = reference(x, w, b, gamma, beta)
    assert jnp.allclose(out, ref_f32, atol=7.5e-2, rtol=7.5e-2), \
        "mismatch vs f32 reference"

    print("KERNEL_OK")
</pallas_src>

<mosaic_0001>
module attributes {stable_mosaic.version = 11 : i64} {
  func.func @fused_convblock_kernel(%arg0: i32, %arg1: memref<32x16xbf16, #tpu.memory_space<vmem>>, %arg2: memref<16x128xbf16, #tpu.memory_space<vmem>>, %arg3: memref<1x128xf32, #tpu.memory_space<vmem>>, %arg4: memref<1x128xf32, #tpu.memory_space<vmem>>, %arg5: memref<32x128xf32, #tpu.memory_space<vmem>>) attributes {dimension_semantics = [#tpu.dimension_semantics<arbitrary>], iteration_bounds = array<i64: 1>, scalar_prefetch = 0 : i64, scratch_operands = 0 : i64, tpu.core_type = #tpu.core_type<tc>, window_params = [{pipeline_mode = #tpu.pipeline_mode<synchronous>, transform_indices = @transform_0, window_bounds = array<i64: 32, 16>}, {pipeline_mode = #tpu.pipeline_mode<synchronous>, transform_indices = @transform_1, window_bounds = array<i64: 16, 128>}, {pipeline_mode = #tpu.pipeline_mode<synchronous>, transform_indices = @transform_2, window_bounds = array<i64: 1, 128>}, {pipeline_mode = #tpu.pipeline_mode<synchronous>, transform_indices = @transform_3, window_bounds = array<i64: 1, 128>}, {pipeline_mode = #tpu.pipeline_mode<synchronous>, transform_indices = @transform_4, window_bounds = array<i64: 32, 128>}]} {
    %c0 = arith.constant 0 : index
    %c0_0 = arith.constant 0 : index
    %0 = vector.load %arg1[%c0, %c0_0] : memref<32x16xbf16, #tpu.memory_space<vmem>>, vector<32x16xbf16>
    %c0_1 = arith.constant 0 : index
    %c0_2 = arith.constant 0 : index
    %1 = vector.load %arg2[%c0_1, %c0_2] : memref<16x128xbf16, #tpu.memory_space<vmem>>, vector<16x128xbf16>
    %cst = arith.constant dense<0.000000e+00> : vector<32x128xf32>
    %2 = tpu.matmul %0, %1, %cst {dimension_numbers = #tpu.dot_dimension_numbers<[1], [0], [0], [1], [0, 0, 1, 1], [], []>} : vector<32x16xbf16>, vector<16x128xbf16>, vector<32x128xf32> -> vector<32x128xf32>
    %cst_3 = arith.constant dense<0.000000e+00> : vector<128xf32>
    %3 = vector.multi_reduction <add>, %2, %cst_3 [0] : vector<32x128xf32> to vector<128xf32>
    %4 = vector.shape_cast %3 : vector<128xf32> to vector<1x128xf32>
    %cst_4 = arith.constant 3.200000e+01 : f32
    %5 = vector.broadcast %cst_4 : f32 to vector<1x128xf32>
    %6 = arith.divf %4, %5 : vector<1x128xf32>
    %7 = vector.broadcast %6 : vector<1x128xf32> to vector<32x128xf32>
    %8 = arith.subf %2, %7 : vector<32x128xf32>
    %9 = arith.mulf %8, %8 : vector<32x128xf32>
    %cst_5 = arith.constant dense<0.000000e+00> : vector<128xf32>
    %10 = vector.multi_reduction <add>, %9, %cst_5 [0] : vector<32x128xf32> to vector<128xf32>
    %11 = vector.shape_cast %10 : vector<128xf32> to vector<1x128xf32>
    %cst_6 = arith.constant 3.200000e+01 : f32
    %12 = vector.broadcast %cst_6 : f32 to vector<1x128xf32>
    %13 = arith.divf %11, %12 : vector<1x128xf32>
    %cst_7 = arith.constant 9.99999974E-6 : f32
    %14 = vector.broadcast %cst_7 : f32 to vector<1x128xf32>
    %15 = arith.addf %13, %14 : vector<1x128xf32>
    %16 = math.rsqrt %15 : vector<1x128xf32>
    %c0_8 = arith.constant 0 : index
    %c0_9 = arith.constant 0 : index
    %17 = vector.load %arg3[%c0_8, %c0_9] : memref<1x128xf32, #tpu.memory_space<vmem>>, vector<1x128xf32>
    %18 = arith.mulf %17, %16 : vector<1x128xf32>
    %19 = vector.broadcast %18 : vector<1x128xf32> to vector<32x128xf32>
    %20 = arith.mulf %8, %19 : vector<32x128xf32>
    %c0_10 = arith.constant 0 : index
    %c0_11 = arith.constant 0 : index
    %21 = vector.load %arg4[%c0_10, %c0_11] : memref<1x128xf32, #tpu.memory_space<vmem>>, vector<1x128xf32>
    %22 = vector.broadcast %21 : vector<1x128xf32> to vector<32x128xf32>
    %23 = arith.addf %20, %22 : vector<32x128xf32>
    %cst_12 = arith.constant 0.000000e+00 : f32
    %24 = vector.broadcast %cst_12 : f32 to vector<32x128xf32>
    %25 = arith.maximumf %23, %24 : vector<32x128xf32>
    %c0_13 = arith.constant 0 : index
    %c0_14 = arith.constant 0 : index
    %26 = vector.load %arg5[%c0_13, %c0_14] : memref<32x128xf32, #tpu.memory_space<vmem>>, vector<32x128xf32>
    tpu.vector_store %arg5[%c0_13, %c0_14], %25 {strides = array<i32>} : memref<32x128xf32, #tpu.memory_space<vmem>>, vector<32x128xf32>,
    return
  }
  func.func @transform_0(%arg0: i32) -> (i32, i32) {
    %c0_i32 = arith.constant 0 : i32
    %c0_i32_0 = arith.constant 0 : i32
    %c0_i32_1 = arith.constant 0 : i32
    return %c0_i32, %c0_i32_0 : i32, i32
  }
  func.func @transform_1(%arg0: i32) -> (i32, i32) {
    %c0_i32 = arith.constant 0 : i32
    %c0_i32_0 = arith.constant 0 : i32
    %c0_i32_1 = arith.constant 0 : i32
    return %c0_i32, %c0_i32_0 : i32, i32
  }
  func.func @transform_2(%arg0: i32) -> (i32, i32) {
    %c0_i32 = arith.constant 0 : i32
    %c0_i32_0 = arith.constant 0 : i32
    %c0_i32_1 = arith.constant 0 : i32
    return %c0_i32, %c0_i32_0 : i32, i32
  }
  func.func @transform_3(%arg0: i32) -> (i32, i32) {
    %c0_i32 = arith.constant 0 : i32
    %c0_i32_0 = arith.constant 0 : i32
    %c0_i32_1 = arith.constant 0 : i32
    return %c0_i32, %c0_i32_0 : i32, i32
  }
  func.func @transform_4(%arg0: i32) -> (i32, i32) {
    %c0_i32 = arith.constant 0 : i32
    %c0_i32_0 = arith.constant 0 : i32
    %c0_i32_1 = arith.constant 0 : i32
    return %c0_i32, %c0_i32_0 : i32, i32
  }
}

</mosaic_0001>

<bundles_post_ra>
// kernel: conv_block_forward.1
= control target key start
LH: loop header
LB: loop body
LE: loop exit
PB: predicated region body
PF: predicated region fallthrough
CT: control target
= control target key end

     0   :  { %vm40_vm0 = vcmask 130048   ;;  %v130_v36 = vlaneseq  ;;  %s234_s1 = inlined_call_operand.vmem [shape: bf16[16,128], index: 1, kind: input, shape index: {}]   ;;  %s235_s0 = inlined_call_operand.vmem [shape: bf16[32,16], index: 0, kind: input, shape index: {}]   ;;  %s236_s2 = inlined_call_operand.vmem [shape: f32[1,128], index: 2, kind: input, shape index: {}]   ;;  %s237_s3 = inlined_call_operand.vmem [shape: f32[1,128], index: 3, kind: input, shape index: {}]   ;;  %s238_s4 = inlined_call_operand.vmem [shape: f32[32,128], index: 4, kind: output, shape index: {}]  }
   0x1   :  { %v177_v0 = vld [vmem:[%s234_s1] sm:$0xff]   ;;  %v179_v2 = vld [vmem:[%s235_s0 + $0x8] sm:$0xff]  }
   0x2   :  { %v178_v1 = vld [vmem:[%s235_s0] sm:$0xff]   ;;  %171 = vmatprep.subr.bf16.mxu0 %v177_v0  ;;  %v131_v37 = vshrl.u32 %v130_v36, 7 }
   0x3   :  { %172 = vmatpush3.bf16.msra.mxu0 %v177_v0  ;;  %173 = vmatprep.mubr.msk.bf16.mxu0 %vm40_vm0, %v178_v1  ;;  %v127_v38 = vld [vmem:[%s236_s2] sm:$0x1] }
   0x4   :  { %v132_v39 = vsub.s32 0, %v131_v37  ;;  %v167_v43 = vld [vmem:[%s237_s3] ss:$0 sm:$0xff] }
   0x6   :  { %174 = vmatmul.mubr.msk.bf16.vlgmr.msra.gmra.mrb[0].mxu0 %vm40_vm0, %v179_v2 }
  0xd9   :  { %v175_v3 = vpop.f32.mrb[0].mxu0 }
  0xda   :  { %v81_v4 = vpop.f32.mrb[1].mxu0 }
  0xdb   :  { %v176_v5 = vpop.f32.mrb[2].mxu0 }
  0xdc   :  { %v84_v6 = vpop.f32.mrb[3].mxu0 }
  0xdd   :  { %v96_v7 = vadd.f32 %v84_v6, %v81_v4 }
  0xdf   :  { %v97_v8 = vadd.f32 %v175_v3, %v96_v7 }
  0xe1   :  { %v98_v9 = vadd.f32 %v176_v5, %v97_v8 }
  0xe3   :  { %v99_v10 = vrot.slane %v98_v9, 4 }
  0xe5   :  { %v100_v11 = vadd.f32 %v99_v10, %v98_v9 }
  0xe7   :  { %v101_v12 = vrot.slane %v100_v11, 2 }
  0xe9   :  { %v102_v13 = vadd.f32 %v101_v12, %v100_v11 }
  0xeb   :  { %v103_v14 = vrot.slane %v102_v13, 1 }
  0xed   :  { %v104_v15 = vadd.f32 %v103_v14, %v102_v13 }
  0xef   :  { %v106_v16 = vmul.f32 0.03125, %v104_v15 }
  0xf1   :  { %v107_v17 = vsub.f32 %v81_v4, %v106_v16  ;;  %v108_v18 = vsub.f32 %v84_v6, %v106_v16  ;;  %v109_v19 = vsub.f32 %v175_v3, %v106_v16  ;;  %v110_v20 = vsub.f32 %v176_v5, %v106_v16 }
  0xf3   :  { %v111_v21 = vmul.f32 %v107_v17, %v107_v17  ;;  %v112_v22 = vmul.f32 %v108_v18, %v108_v18  ;;  %v113_v23 = vmul.f32 %v109_v19, %v109_v19  ;;  %v114_v25 = vmul.f32 %v110_v20, %v110_v20 }
  0xf5   :  { %v115_v24 = vadd.f32 %v112_v22, %v111_v21 }
  0xf7   :  { %v116_v26 = vadd.f32 %v115_v24, %v113_v23 }
  0xf9   :  { %v117_v27 = vadd.f32 %v116_v26, %v114_v25 }
  0xfb   :  { %v118_v28 = vrot.slane %v117_v27, 4 }
  0xfd   :  { %v119_v29 = vadd.f32 %v118_v28, %v117_v27 }
  0xff   :  { %v120_v30 = vrot.slane %v119_v29, 2 }
 0x101   :  { %v121_v31 = vadd.f32 %v120_v30, %v119_v29 }
 0x103   :  { %v122_v32 = vrot.slane %v121_v31, 1 }
 0x105   :  { %v123_v33 = vadd.f32 %v122_v32, %v121_v31 }
 0x107   :  { %v124_v34 = vmul.f32 0.03125, %v123_v33 }
 0x109   :  { %v125_v35 = vadd.f32 1e-05, %v124_v34 }
 0x10b   :  { %180 = vrsqrt.f32 %v125_v35 }
 0x115   :  { %v181_v40 = vpop.eup %180 }
 0x116   :  { %v128_v41 = vmul.f32 %v181_v40, %v127_v38 }
 0x118   :  { %v133_v42 = vrot.slane %v128_v41, %v132_v39 }
 0x11a   :  { %v135_v44 = vmul.f32 %v133_v42, %v107_v17  ;;  %v136_v45 = vmul.f32 %v133_v42, %v108_v18  ;;  %v137_v46 = vmul.f32 %v133_v42, %v109_v19  ;;  %v138_v47 = vmul.f32 %v133_v42, %v110_v20 }
 0x11c   :  { %v146_v48 = vadd.f32 %v167_v43, %v135_v44  ;;  %v147_v49 = vadd.f32 %v167_v43, %v136_v45  ;;  %v148_v50 = vadd.f32 %v167_v43, %v137_v46  ;;  %v149_v51 = vadd.f32 %v167_v43, %v138_v47 }
 0x11e   :  { %v150_v52 = vmax.f32 %v146_v48, 0.0  ;;  %v151_v53 = vmax.f32 %v147_v49, 0.0  ;;  %v152_v54 = vmax.f32 %v148_v50, 0.0  ;;  %v153_v55 = vmax.f32 %v149_v51, 0.0 }
 0x120   :  { %154 = vst [vmem:[%s238_s4] sm:$0xff] %v150_v52  ;;  %155 = vst [vmem:[%s238_s4 + $0x8] sm:$0xff] %v151_v53 }
 0x121   :  { %156 = vst [vmem:[%s238_s4 + $0x10] sm:$0xff] %v152_v54  ;;  %157 = vst [vmem:[%s238_s4 + $0x18] sm:$0xff] %v153_v55 }

</bundles_post_ra>
